<compile_context>
chip_gen: v5e
topology: v5e:2x2
jax: 0.10.0
libtpu: 0.0.40
codegen_flags: <defaults>
</compile_context>

<pallas_src>
import functools

import jax
import jax.numpy as jnp
from jax.experimental import pallas as pl
from jax.experimental.pallas import tpu as pltpu


LANE = 128  # pad channel-like dims to a full lane width


def _round_up(x, m):
    return ((x + m - 1) // m) * m


# ----------------------------------------------------------------------------
# Fused backbone + neck + head kernel
# ----------------------------------------------------------------------------
def _fused_kernel(x_ref, wbb_ref, bbb_ref, wnk_ref, bnk_ref, whd_ref, bhd_ref,
                  out_ref, acc_ref, *, tm, valid_rows, inv_hw, need_mask):
    # x_ref : (tm, 9*C_in) bf16   im2col rows (one per output pixel)
    # wbb   : (9*C_in, 128) bf16  conv3x3 weights flattened (tap-major, cout pad)
    # bbb   : (1, 128) f32
    # wnk   : (128, 128) bf16     conv1x1 weights (padded)
    # bnk   : (1, 128) f32
    # whd   : (128, 128) bf16     classifier weights (padded)
    # bhd   : (1, 128) f32
    # out   : (1, 128) f32        logits (padded) for this batch element
    # acc   : (1, 128) f32        scratch: running GAP channel sums
    t = pl.program_id(1)

    @pl.when(t == 0)
    def _init():
        acc_ref[...] = jnp.zeros_like(acc_ref)

    # --- backbone: 3x3 conv == one MXU matmul on im2col rows -----------------
    bb = jnp.dot(x_ref[...], wbb_ref[...], preferred_element_type=jnp.float32)
    bb = jnp.maximum(bb + bbb_ref[...], 0.0)                 # (tm, 128) f32

    # --- neck: 1x1 conv (pure channel matmul) --------------------------------
    nk = jnp.dot(bb.astype(jnp.bfloat16), wnk_ref[...],
                 preferred_element_type=jnp.float32)
    nk = jnp.maximum(nk + bnk_ref[...], 0.0)                 # (tm, 128) f32

    # --- head (part 1): GAP partial sums --------------------------------------
    if need_mask:
        # Only emitted when the pixel count was zero-padded up to a TM multiple.
        row = jax.lax.broadcasted_iota(jnp.int32, (tm, 1), 0) + t * tm
        nk = jnp.where(row < valid_rows, nk, 0.0)
    acc_ref[...] += jnp.sum(nk, axis=0, keepdims=True)

    # --- head (part 2): classifier on the last tile of this image ------------
    @pl.when(t == pl.num_programs(1) - 1)
    def _finalize():
        pooled = acc_ref[...] * inv_hw                       # global 1/(H*W)
        logits = jnp.dot(pooled.astype(jnp.bfloat16), whd_ref[...],
                         preferred_element_type=jnp.float32) + bhd_ref[...]
        out_ref[...] = logits.astype(out_ref.dtype)


# ----------------------------------------------------------------------------
# TaskModel (JAX / Pallas version)
# ----------------------------------------------------------------------------
class TaskModelPallas:
    """task=classification, backbone=conv3x3, neck=conv1x1, head=gap+linear."""

    def __init__(self, in_channels=4, bb_channels=16, neck_channels=32,
                 num_classes=10, tile_rows=2048, seed=0):
        self.task = "classification"
        self.name = "task_model_pallas"
        self.backbone_name = "conv3x3_backbone"
        self.neck_name = "conv1x1_neck"
        self.head_name = "gap_linear_head"

        self.in_channels = in_channels
        self.bb_channels = bb_channels
        self.neck_channels = neck_channels
        self.num_classes = num_classes
        self.tile_rows = tile_rows  # target pixel rows per grid step

        k = jax.random.PRNGKey(seed)
        k1, k2, k3, k4, k5, k6 = jax.random.split(k, 6)

        # Backbone conv weight, PyTorch layout (out, in, kh, kw) ->
        # (kh, kw, in, out) -> flattened (9*in, out_padded) bf16, tap-major
        # (matches host im2col concatenation order: (i, j) row-major, channels
        # contiguous inside each tap).
        w_bb = jax.random.normal(k1, (bb_channels, in_channels, 3, 3),
                                 jnp.float32) * 0.1
        w_bb = jnp.transpose(w_bb, (2, 3, 1, 0))             # (3,3,in,out)
        w_bb = jnp.pad(w_bb, ((0, 0), (0, 0), (0, 0), (0, LANE - bb_channels)))
        self.w_bb = w_bb.reshape(9 * in_channels, LANE).astype(jnp.bfloat16)
        b_bb = jax.random.normal(k2, (bb_channels,), jnp.float32) * 0.1
        self.b_bb = jnp.pad(b_bb, (0, LANE - bb_channels)).reshape(1, LANE)

        # Neck 1x1 conv: (out, in, 1, 1) -> (in, out), padded to (128, 128).
        w_nk = jax.random.normal(k3, (neck_channels, bb_channels, 1, 1),
                                 jnp.float32) * 0.1
        w_nk = jnp.transpose(w_nk, (2, 3, 1, 0)).reshape(bb_channels,
                                                         neck_channels)
        self.w_nk = jnp.pad(
            w_nk, ((0, LANE - bb_channels), (0, LANE - neck_channels))
        ).astype(jnp.bfloat16)
        b_nk = jax.random.normal(k4, (neck_channels,), jnp.float32) * 0.1
        self.b_nk = jnp.pad(b_nk, (0, LANE - neck_channels)).reshape(1, LANE)

        # Head linear: PyTorch (num_classes, neck) -> (neck, num_classes), padded.
        w_hd = jax.random.normal(k5, (num_classes, neck_channels),
                                 jnp.float32) * 0.1
        self.w_hd = jnp.pad(
            w_hd.T, ((0, LANE - neck_channels), (0, LANE - num_classes))
        ).astype(jnp.bfloat16)
        b_hd = jax.random.normal(k6, (num_classes,), jnp.float32) * 0.1
        self.b_hd = jnp.pad(b_hd, (0, LANE - num_classes)).reshape(1, LANE)

    def _get_name(self):
        return (f"{self.__class__.__name__}[task={self.task}, "
                f"backbone={self.backbone_name}, neck={self.neck_name}, "
                f"head={self.head_name}]")

    def forward(self, x_nchw, label_size=None, targets=None):
        # x: (B, C_in, H, W) -- PyTorch NCHW convention
        B, C, H, W = x_nchw.shape
        assert C == self.in_channels
        M = H * W
        K9 = 9 * C

        # Tile size along the pixel axis: multiple of 8 (sublane packing), and
        # each grid step's footprint stays small (TM*128 f32 temporaries).
        tm = min(_round_up(self.tile_rows, 8), _round_up(M, 8))
        m_pad = _round_up(M, tm)
        nh = m_pad // tm
        need_mask = (m_pad != M)

        # Host-side layout prep (cheap XLA on the small input): NHWC, spatial
        # zero-pad, im2col -> (B, H*W, 9*C_in) bf16 rows (one per output pixel).
        x = jnp.transpose(x_nchw, (0, 2, 3, 1)).astype(jnp.bfloat16)
        xp = jnp.pad(x, ((0, 0), (1, 1), (1, 1), (0, 0)))
        patches = jnp.concatenate(
            [xp[:, i:i + H, j:j + W, :] for i in range(3) for j in range(3)],
            axis=-1).reshape(B, M, K9)
        if need_mask:
            patches = jnp.pad(patches, ((0, 0), (0, m_pad - M), (0, 0)))

        kernel = functools.partial(_fused_kernel, tm=tm, valid_rows=M,
                                   inv_hw=1.0 / float(M), need_mask=need_mask)

        cost = pl.CostEstimate(
            flops=2 * B * M * (K9 * LANE + LANE * LANE) + 2 * B * LANE * LANE,
            transcendentals=0,
            bytes_accessed=int(
                patches.size * 2
                + (self.w_bb.size + self.w_nk.size + self.w_hd.size) * 2
                + (self.b_bb.size + self.b_nk.size + self.b_hd.size) * 4
                + B * LANE * 4),
        )

        out = pl.pallas_call(
            kernel,
            out_shape=jax.ShapeDtypeStruct((B, 1, LANE), jnp.float32),
            grid_spec=pltpu.PrefetchScalarGridSpec(
                num_scalar_prefetch=0,
                grid=(B, nh),
                in_specs=[
                    pl.BlockSpec((None, tm, K9), lambda b, t: (b, t, 0)),
                    pl.BlockSpec((K9, LANE), lambda b, t: (0, 0)),
                    pl.BlockSpec((1, LANE), lambda b, t: (0, 0)),
                    pl.BlockSpec((LANE, LANE), lambda b, t: (0, 0)),
                    pl.BlockSpec((1, LANE), lambda b, t: (0, 0)),
                    pl.BlockSpec((LANE, LANE), lambda b, t: (0, 0)),
                    pl.BlockSpec((1, LANE), lambda b, t: (0, 0)),
                ],
                out_specs=pl.BlockSpec((None, 1, LANE), lambda b, t: (b, 0, 0)),
                scratch_shapes=[pltpu.VMEM((1, LANE), jnp.float32)],
            ),
            compiler_params=pltpu.CompilerParams(
                dimension_semantics=("parallel", "arbitrary")),
            cost_estimate=cost,
        )(patches, self.w_bb, self.b_bb, self.w_nk, self.b_nk,
          self.w_hd, self.b_hd)

        return out[:, 0, :self.num_classes]

    # TODO(synk): deploy()/convert_to_deploy and _freeze_backbone are PyTorch
    # module-mutation / training utilities with no Pallas equivalent; omitted.


# ----------------------------------------------------------------------------
# Pure-JAX reference (same bf16-in / f32-accumulate numerics) for sanity check
# ----------------------------------------------------------------------------
def reference_forward(model, x_nchw):
    B, C, H, W = x_nchw.shape
    x = jnp.transpose(x_nchw, (0, 2, 3, 1)).astype(jnp.bfloat16)
    xp = jnp.pad(x, ((0, 0), (1, 1), (1, 1), (0, 0)))
    patches = jnp.concatenate(
        [xp[:, i:i + H, j:j + W, :] for i in range(3) for j in range(3)],
        axis=-1).reshape(B * H * W, 9 * C)
    bb = jnp.maximum(
        jnp.dot(patches, model.w_bb, preferred_element_type=jnp.float32)
        + model.b_bb, 0.0)
    nk = jnp.maximum(
        jnp.dot(bb.astype(jnp.bfloat16), model.w_nk,
                preferred_element_type=jnp.float32) + model.b_nk, 0.0)
    pooled = nk.reshape(B, H * W, LANE).mean(axis=1)
    logits = jnp.dot(pooled.astype(jnp.bfloat16), model.w_hd,
                     preferred_element_type=jnp.float32) + model.b_hd
    return logits[:, :model.num_classes]


if __name__ == "__main__":
    key = jax.random.PRNGKey(0)
    B, C, H, W = 2, 4, 16, 16
    x = jax.random.normal(key, (B, C, H, W), jnp.float32)

    # tile_rows=128 -> TM=128, 2 pixel tiles per image: exercises both the
    # streamed-tile path and the cross-tile GAP accumulator.
    model = TaskModelPallas(in_channels=C, bb_channels=16, neck_channels=32,
                            num_classes=10, tile_rows=128, seed=0)

    out = jax.block_until_ready(model.forward(x))
    ref = jax.block_until_ready(reference_forward(model, x))

    assert out.shape == (B, 10)
    max_diff = float(jnp.max(jnp.abs(out - ref)))
    assert jnp.allclose(out, ref, atol=5e-3, rtol=5e-3), (
        f"mismatch vs reference, max abs diff = {max_diff}")

    print("KERNEL_OK")
</pallas_src>

<mosaic_0001>
module attributes {stable_mosaic.version = 11 : i64} {
  func.func @_fused_kernel(%arg0: i32, %arg1: i32, %arg2: memref<1x128x36xbf16, #tpu.memory_space<vmem>>, %arg3: memref<36x128xbf16, #tpu.memory_space<vmem>>, %arg4: memref<1x128xf32, #tpu.memory_space<vmem>>, %arg5: memref<128x128xbf16, #tpu.memory_space<vmem>>, %arg6: memref<1x128xf32, #tpu.memory_space<vmem>>, %arg7: memref<128x128xbf16, #tpu.memory_space<vmem>>, %arg8: memref<1x128xf32, #tpu.memory_space<vmem>>, %arg9: memref<1x1x128xf32, #tpu.memory_space<vmem>>, %arg10: memref<1x128xf32, #tpu.memory_space<vmem>>) attributes {dimension_semantics = [#tpu.dimension_semantics<parallel>, #tpu.dimension_semantics<arbitrary>], iteration_bounds = array<i64: 2, 2>, scalar_prefetch = 0 : i64, scratch_operands = 1 : i64, tpu.core_type = #tpu.core_type<tc>, window_params = [{transform_indices = @transform_0, window_bounds = array<i64: 1, 128, 36>}, {pipeline_mode = #tpu.pipeline_mode<synchronous>, transform_indices = @transform_1, window_bounds = array<i64: 36, 128>}, {pipeline_mode = #tpu.pipeline_mode<synchronous>, transform_indices = @transform_2, window_bounds = array<i64: 1, 128>}, {pipeline_mode = #tpu.pipeline_mode<synchronous>, transform_indices = @transform_3, window_bounds = array<i64: 128, 128>}, {pipeline_mode = #tpu.pipeline_mode<synchronous>, transform_indices = @transform_4, window_bounds = array<i64: 1, 128>}, {pipeline_mode = #tpu.pipeline_mode<synchronous>, transform_indices = @transform_5, window_bounds = array<i64: 128, 128>}, {pipeline_mode = #tpu.pipeline_mode<synchronous>, transform_indices = @transform_6, window_bounds = array<i64: 1, 128>}, {transform_indices = @transform_7, window_bounds = array<i64: 1, 1, 128>}]} {
    %c0_i32 = arith.constant 0 : i32
    %0 = arith.cmpi eq, %arg1, %c0_i32 : i32
    %1 = arith.extui %0 : i1 to i32
    %c0_i32_0 = arith.constant 0 : i32
    %2 = arith.cmpi ne, %1, %c0_i32_0 : i32
    scf.if %2 {
      %cst_20 = arith.constant 0.000000e+00 : f32
      %28 = vector.broadcast %cst_20 : f32 to vector<1x128xf32>
      %c0_21 = arith.constant 0 : index
      %c0_22 = arith.constant 0 : index
      %29 = vector.load %arg10[%c0_21, %c0_22] : memref<1x128xf32, #tpu.memory_space<vmem>>, vector<1x128xf32>
      tpu.vector_store %arg10[%c0_21, %c0_22], %28 {strides = array<i32>} : memref<1x128xf32, #tpu.memory_space<vmem>>, vector<1x128xf32>,
    } else {
    }
    %c0 = arith.constant 0 : index
    %c0_1 = arith.constant 0 : index
    %c0_2 = arith.constant 0 : index
    %3 = vector.load %arg2[%c0, %c0_1, %c0_2] : memref<1x128x36xbf16, #tpu.memory_space<vmem>>, vector<1x128x36xbf16>
    %4 = vector.shape_cast %3 : vector<1x128x36xbf16> to vector<128x36xbf16>
    %c0_3 = arith.constant 0 : index
    %c0_4 = arith.constant 0 : index
    %5 = vector.load %arg3[%c0_3, %c0_4] : memref<36x128xbf16, #tpu.memory_space<vmem>>, vector<36x128xbf16>
    %cst = arith.constant dense<0.000000e+00> : vector<128x128xf32>
    %6 = tpu.matmul %4, %5, %cst {dimension_numbers = #tpu.dot_dimension_numbers<[1], [0], [0], [1], [0, 0, 1, 1], [], []>} : vector<128x36xbf16>, vector<36x128xbf16>, vector<128x128xf32> -> vector<128x128xf32>
    %c0_5 = arith.constant 0 : index
    %c0_6 = arith.constant 0 : index
    %7 = vector.load %arg4[%c0_5, %c0_6] : memref<1x128xf32, #tpu.memory_space<vmem>>, vector<1x128xf32>
    %8 = vector.broadcast %7 : vector<1x128xf32> to vector<128x128xf32>
    %9 = arith.addf %6, %8 : vector<128x128xf32>
    %cst_7 = arith.constant 0.000000e+00 : f32
    %10 = vector.broadcast %cst_7 : f32 to vector<128x128xf32>
    %11 = arith.maximumf %9, %10 : vector<128x128xf32>
    %12 = arith.truncf %11 : vector<128x128xf32> to vector<128x128xbf16>
    %c0_8 = arith.constant 0 : index
    %c0_9 = arith.constant 0 : index
    %13 = vector.load %arg5[%c0_8, %c0_9] : memref<128x128xbf16, #tpu.memory_space<vmem>>, vector<128x128xbf16>
    %cst_10 = arith.constant dense<0.000000e+00> : vector<128x128xf32>
    %14 = tpu.matmul %12, %13, %cst_10 {dimension_numbers = #tpu.dot_dimension_numbers<[1], [0], [0], [1], [0, 0, 1, 1], [], []>} : vector<128x128xbf16>, vector<128x128xbf16>, vector<128x128xf32> -> vector<128x128xf32>
    %c0_11 = arith.constant 0 : index
    %c0_12 = arith.constant 0 : index
    %15 = vector.load %arg6[%c0_11, %c0_12] : memref<1x128xf32, #tpu.memory_space<vmem>>, vector<1x128xf32>
    %16 = vector.broadcast %15 : vector<1x128xf32> to vector<128x128xf32>
    %17 = arith.addf %14, %16 : vector<128x128xf32>
    %cst_13 = arith.constant 0.000000e+00 : f32
    %18 = vector.broadcast %cst_13 : f32 to vector<128x128xf32>
    %19 = arith.maximumf %17, %18 : vector<128x128xf32>
    %c0_14 = arith.constant 0 : index
    %c0_15 = arith.constant 0 : index
    %20 = vector.load %arg10[%c0_14, %c0_15] : memref<1x128xf32, #tpu.memory_space<vmem>>, vector<1x128xf32>
    %cst_16 = arith.constant dense<0.000000e+00> : vector<128xf32>
    %21 = vector.multi_reduction <add>, %19, %cst_16 [0] : vector<128x128xf32> to vector<128xf32>
    %22 = vector.shape_cast %21 : vector<128xf32> to vector<1x128xf32>
    %23 = arith.addf %20, %22 : vector<1x128xf32>
    %c0_17 = arith.constant 0 : index
    %c0_18 = arith.constant 0 : index
    %24 = vector.load %arg10[%c0_17, %c0_18] : memref<1x128xf32, #tpu.memory_space<vmem>>, vector<1x128xf32>
    tpu.vector_store %arg10[%c0_17, %c0_18], %23 {strides = array<i32>} : memref<1x128xf32, #tpu.memory_space<vmem>>, vector<1x128xf32>,
    %c1_i32 = arith.constant 1 : i32
    %25 = arith.cmpi eq, %arg1, %c1_i32 : i32
    %26 = arith.extui %25 : i1 to i32
    %c0_i32_19 = arith.constant 0 : i32
    %27 = arith.cmpi ne, %26, %c0_i32_19 : i32
    scf.if %27 {
      %c0_20 = arith.constant 0 : index
      %c0_21 = arith.constant 0 : index
      %28 = vector.load %arg10[%c0_20, %c0_21] : memref<1x128xf32, #tpu.memory_space<vmem>>, vector<1x128xf32>
      %cst_22 = arith.constant 3.906250e-03 : f32
      %29 = vector.broadcast %cst_22 : f32 to vector<1x128xf32>
      %30 = arith.mulf %28, %29 : vector<1x128xf32>
      %31 = arith.truncf %30 : vector<1x128xf32> to vector<1x128xbf16>
      %c0_23 = arith.constant 0 : index
      %c0_24 = arith.constant 0 : index
      %32 = vector.load %arg7[%c0_23, %c0_24] : memref<128x128xbf16, #tpu.memory_space<vmem>>, vector<128x128xbf16>
      %cst_25 = arith.constant dense<0.000000e+00> : vector<1x128xf32>
      %33 = tpu.matmul %31, %32, %cst_25 {dimension_numbers = #tpu.dot_dimension_numbers<[1], [0], [0], [1], [0, 0, 1, 1], [], []>} : vector<1x128xbf16>, vector<128x128xbf16>, vector<1x128xf32> -> vector<1x128xf32>
      %c0_26 = arith.constant 0 : index
      %c0_27 = arith.constant 0 : index
      %34 = vector.load %arg8[%c0_26, %c0_27] : memref<1x128xf32, #tpu.memory_space<vmem>>, vector<1x128xf32>
      %35 = arith.addf %33, %34 : vector<1x128xf32>
      %c0_28 = arith.constant 0 : index
      %c0_29 = arith.constant 0 : index
      %c0_30 = arith.constant 0 : index
      %36 = vector.load %arg9[%c0_28, %c0_29, %c0_30] : memref<1x1x128xf32, #tpu.memory_space<vmem>>, vector<1x1x128xf32>
      %37 = vector.shape_cast %36 : vector<1x1x128xf32> to vector<1x128xf32>
      %38 = vector.shape_cast %35 : vector<1x128xf32> to vector<1x1x128xf32>
      tpu.vector_store %arg9[%c0_28, %c0_29, %c0_30], %38 {strides = array<i32>} : memref<1x1x128xf32, #tpu.memory_space<vmem>>, vector<1x1x128xf32>,
    } else {
    }
    return
  }
  func.func @transform_0(%arg0: i32, %arg1: i32) -> (i32, i32, i32) {
    %c0_i32 = arith.constant 0 : i32
    %c0_i32_0 = arith.constant 0 : i32
    return %arg0, %arg1, %c0_i32 : i32, i32, i32
  }
  func.func @transform_1(%arg0: i32, %arg1: i32) -> (i32, i32) {
    %c0_i32 = arith.constant 0 : i32
    %c0_i32_0 = arith.constant 0 : i32
    %c0_i32_1 = arith.constant 0 : i32
    return %c0_i32, %c0_i32_0 : i32, i32
  }
  func.func @transform_2(%arg0: i32, %arg1: i32) -> (i32, i32) {
    %c0_i32 = arith.constant 0 : i32
    %c0_i32_0 = arith.constant 0 : i32
    %c0_i32_1 = arith.constant 0 : i32
    return %c0_i32, %c0_i32_0 : i32, i32
  }
  func.func @transform_3(%arg0: i32, %arg1: i32) -> (i32, i32) {
    %c0_i32 = arith.constant 0 : i32
    %c0_i32_0 = arith.constant 0 : i32
    %c0_i32_1 = arith.constant 0 : i32
    return %c0_i32, %c0_i32_0 : i32, i32
  }
  func.func @transform_4(%arg0: i32, %arg1: i32) -> (i32, i32) {
    %c0_i32 = arith.constant 0 : i32
    %c0_i32_0 = arith.constant 0 : i32
    %c0_i32_1 = arith.constant 0 : i32
    return %c0_i32, %c0_i32_0 : i32, i32
  }
  func.func @transform_5(%arg0: i32, %arg1: i32) -> (i32, i32) {
    %c0_i32 = arith.constant 0 : i32
    %c0_i32_0 = arith.constant 0 : i32
    %c0_i32_1 = arith.constant 0 : i32
    return %c0_i32, %c0_i32_0 : i32, i32
  }
  func.func @transform_6(%arg0: i32, %arg1: i32) -> (i32, i32) {
    %c0_i32 = arith.constant 0 : i32
    %c0_i32_0 = arith.constant 0 : i32
    %c0_i32_1 = arith.constant 0 : i32
    return %c0_i32, %c0_i32_0 : i32, i32
  }
  func.func @transform_7(%arg0: i32, %arg1: i32) -> (i32, i32, i32) {
    %c0_i32 = arith.constant 0 : i32
    %c0_i32_0 = arith.constant 0 : i32
    %c0_i32_1 = arith.constant 0 : i32
    return %arg0, %c0_i32, %c0_i32_0 : i32, i32, i32
  }
}

</mosaic_0001>

<bundles_post_ra>
// kernel: tpu_custom_call.1
= control target key start
LH: loop header
LB: loop body
LE: loop exit
PB: predicated region body
PF: predicated region fallthrough
CT: control target
= control target key end

     0   :  { %12 = vsyncpa [#allocation4], 0  ;;  %s1404_s0 = inlined_call_operand.vmem [shape: bf16[2,256,36], index: 0, kind: input, shape index: {}]   ;;  %s1405_s1 = inlined_call_operand.vmem [shape: bf16[36,128], index: 1, kind: input, shape index: {}]   ;;  %s1406_s2 = inlined_call_operand.vmem [shape: f32[1,128], index: 2, kind: input, shape index: {}]   ;;  %s1407_s3 = inlined_call_operand.vmem [shape: bf16[128,128], index: 3, kind: input, shape index: {}]   ;;  %s1408_s4 = inlined_call_operand.vmem [shape: f32[1,128], index: 4, kind: input, shape index: {}]   ;;  %s1409_s5 = inlined_call_operand.vmem [shape: bf16[128,128], index: 5, kind: input, shape index: {}]   ;;  %s1410_s6 = inlined_call_operand.vmem [shape: f32[1,128], index: 6, kind: input, shape index: {}]   ;;  %s1411_s7 = inlined_call_operand.hbm [shape: f32[2,1,128], index: 7, kind: output, shape index: {}]  }
   0x1   :  { %14 = vsyncpa [#allocation4 + $0x1], 0  ;;  %s1192_s24 = smov 0   ;;  %s1194_s25 = smov 0  }
   0x2   :  { %s1196_s26 = smov 0   ;;  %s1198_s27 = smov 0  }
   0x3   :  { %s1200_s28 = smov 0   ;;  %s1202_s29 = smov 0  }
   0x4   :  { %s1204_s30 = smov 0   ;;  %s1206_s8 = smov 0  }
   0x5 LB: > { %s820_s9 = sadd.s32 4294967295, %s1149_s8   ;;  %s821_s10 = sadd.s32 4294967294, %s1149_s8   ;;  %s1149_s8 = sphi %s1206_s8, %s20_s8   ;;  %s1145_s30 = sphi %s1204_s30, %s1425_s30   ;;  %s1141_s29 = sphi %s1202_s29, %s1424_s29   ;;  %s1137_s28 = sphi %s1200_s28, %s1423_s28   ;;  %s1133_s27 = sphi %s1198_s27, %s1422_s27   ;;  %s1129_s26 = sphi %s1196_s26, %s1421_s26   ;;  %s1125_s25 = sphi %s1194_s25, %s1420_s25   ;;  %s1121_s24 = sphi %s1192_s24, %s1419_s24  }
   0x6   : > { %s29_s11 = sadd.s32 1, %s1141_s29  ;;  %s32_s12 = sadd.s32 1, %s1145_s30 }
   0x7   : > { %p30_p0 = scmp.ge.s32.totalorder %s29_s11, 2  ;;  %p203_p1 = scmp.ne.s32.totalorder %s1129_s26, %s1125_s25 }
   0x8   : > { %p204_p2 = scmp.eq.s32.totalorder %s820_s9, 3  ;;  %p209_p4 = scmp.ne.s32.totalorder %s1125_s25, %s1121_s24 }
   0x9   : > { %s1427_s11 = smov (%p30_p0, %s29_s11), 0  ;;  %s1429_s12 = smov (!%p30_p0, %s32_s12), %s1145_s30 }
   0xa   : > { %1413 = sst [smem:[#allocation6_spill]] %s1427_s11  ;;  %p1241_p3 = por %p204_p2, %p203_p1 }
   0xb   : > { %p34_p5 = scmp.ge.s32.totalorder %s1429_s12, 2  ;;  %p210_p6 = scmp.eq.s32.totalorder %s821_s10, 3 }
   0xc   : > { %p824_p7 = scmp.ge.s32.totalorder %s1149_s8, 1  ;;  %p259_p8 = scmp.lt.s32.totalorder %s1149_s8, 5 }
   0xd   : > { %s1431_s12 = smov (%p34_p5, %s1429_s12), 0  ;;  %p1251_p9 = por %p210_p6, %p209_p4 }
   0xe   : > { %1415 = sst [smem:[#allocation7_spill]] %s1431_s12  ;;  %p260_p10 = pnand %p824_p7, %p259_p8 }
   0xf   : > { %s190_s15 = ssub.s32 %s1145_s30, %s1431_s12  ;;  %s193_s16 = sadd.s32 1, %s1129_s26 }
  0x10   : > { %p191_p11 = scmp.eq.s32.totalorder %s190_s15, 0  ;;  %263 = sbr.rel (%p260_p10) target bundleno = 639 (0x27f), region = 48 }
  0x11   : > { %s292_s18 = sand.u32 (!%p260_p10), 1, %s1125_s25   ;;  %s825_s19 = sshll.u32 (!%p260_p10), %s1133_s27, 4 }
  0x12   : > { %s1259_s17 = scalar_select %p191_p11, %s1129_s26, %s193_s16  }
  0x13   : > { %p295_p12 = scmp.lt.s32.totalorder (!%p260_p10), %s1137_s28, 1  ;;  %p297_p13 = scmp.lt.s32.totalorder (!%p260_p10), %s825_s19, 31 }
  0x14   : > { %s1272_s16 = scalar_lea.vmem (!%p260_p10), [#allocation3], %s292_s18  ;;  %p828_p0 = scmp.ne.s32.totalorder (!%p260_p10), %s1133_s27, 0 }
  0x15   : > { %s296_s20 = scalar_select %p295_p12, %s1137_s28, 1 }
  0x16   : > { %s1433_s19 = smov (!%p297_p13, %s825_s19), 31  ;;  %308 = sbr.rel (%p828_p0) target bundleno = 29 (0x1d), region = 52 }
  0x17   : > { %s826_s21 = sshll.u32 %s296_s20, 5 }
  0x18   : > { %s300_s22 = sadd.s32 %s826_s21, %s1433_s19 }
  0x19   : > { %s827_s23 = sshll.u32 %s300_s22, 2 }
  0x1a   : > { %s1268_s15 = scalar_lea.vmem %s1404_s0, %s827_s23 }
  0x1b   : > { %v1151_v0 = vmov 0.0  }
  0x1c   : > { %309 = vst [vmem:[#allocation2] sm:$0x1] %v1151_v0 }
  0x1d PF: > { %v330_v1 = vld [vmem:[%s1405_s1 + $0x10] sm:$0x3]  ;;  %vm415_vm0 = vcmask 1041408   ;;  %v953_v5 = vld [vmem:[%s1405_s1 + $0x8] sm:$0xff]  ;;  %v952_v6 = vld [vmem:[%s1405_s1] sm:$0xff]  ;;  %vm390_vm1 = vcmask 293888  }
  0x1e   : > { %v384_v2 = vunpack.c.l.b16 %v330_v1  ;;  %v944_v7 = vld [vmem:[%s1268_s15] sm:$0xff]  ;;  %v945_v8 = vld [vmem:[%s1268_s15 + $0x8] sm:$0xff]  ;;  %v946_v9 = vld [vmem:[%s1268_s15 + $0x10] sm:$0xff]  ;;  %p909_p1 = scmp.ne.s32.totalorder %s1133_s27, 1 }
  0x1f   : > { %v949_v10 = vld [vmem:[%s1268_s15 + $0x28] sm:$0xff]  ;;  %v961_v11 = vld [vmem:[%s1407_s3 + $0x38] sm:$0xff]  ;;  %v960_v12 = vld [vmem:[%s1407_s3 + $0x30] sm:$0xff] }
  0x20   : > { %v387_v3 = vpack.c.b16 %v384_v2, %v384_v2  ;;  %560 = vmatpush.bf16.msra.mxu1 %v961_v11  ;;  %973 = vmatpush.bf16.msra.mxu2 %v961_v11  ;;  %v959_v13 = vld [vmem:[%s1407_s3 + $0x28] sm:$0xff]  ;;  %v947_v14 = vld [vmem:[%s1268_s15 + $0x18] sm:$0xff]  ;;  %v958_v15 = vld [vmem:[%s1407_s3 + $0x20] sm:$0xff] }
  0x21   : > { %v950_v16 = vld [vmem:[%s1268_s15 + $0x30] sm:$0xff]  ;;  %v948_v17 = vld [vmem:[%s1268_s15 + $0x20] sm:$0xff]  ;;  %v951_v18 = vld [vmem:[%s1268_s15 + $0x38] sm:$0xff] }
  0x22   : > { %v417_v4 = vsel %vm415_vm0, %v387_v3, 0  ;;  %v957_v19 = vld [vmem:[%s1407_s3 + $0x18] sm:$0xff]  ;;  %v956_v20 = vld [vmem:[%s1407_s3 + $0x10] sm:$0xff]  ;;  %v955_v21 = vld [vmem:[%s1407_s3 + $0x8] sm:$0xff] }
  0x23   : > { %424 = vmatpush.bf16.msra.mxu0 %v417_v4  ;;  %970 = vmatpush.bf16.msra.mxu3 %v417_v4  ;;  %v954_v22 = vld [vmem:[%s1407_s3] sm:$0xff] }
  0x24   : > { %561 = vmatpush.bf16.msra.mxu1 %v960_v12  ;;  %974 = vmatpush.bf16.msra.mxu2 %v960_v12  ;;  %v1053_v24 = vld [vmem:[%s1406_s2] ss:$0 sm:$0xff] }
  0x27   : > { %425 = vmatpush.bf16.msra.mxu0 %v953_v5  ;;  %971 = vmatpush.bf16.msra.mxu3 %v953_v5 }
  0x28   : > { %562 = vmatpush.bf16.msra.mxu1 %v959_v13  ;;  %975 = vmatpush.bf16.msra.mxu2 %v959_v13 }
  0x2b   : > { %426 = vmatpush.bf16.msra.mxu0 %v952_v6  ;;  %972 = vmatpush.bf16.msra.mxu3 %v952_v6 }
  0x2c   : > { %563 = vmatpush.bf16.msra.mxu1 %v958_v15  ;;  %976 = vmatpush.bf16.msra.mxu2 %v958_v15 }
  0x2e   : > { %869 = vmatmul.msk.bf16.vlgmr.msra.gmra.mxu0 %vm390_vm1, %v944_v7  ;;  %874 = vmatmul.msk.bf16.vlgmr.msra.gmra.mxu3 %vm390_vm1, %v949_v10 }
  0x30   : > { %564 = vmatpush.bf16.msra.mxu1 %v957_v19  ;;  %977 = vmatpush.bf16.msra.mxu2 %v957_v19 }
  0x34   : > { %565 = vmatpush.bf16.msra.mxu1 %v956_v20  ;;  %978 = vmatpush.bf16.msra.mxu2 %v956_v20 }
  0x38   : > { %566 = vmatpush.bf16.msra.mxu1 %v955_v21  ;;  %979 = vmatpush.bf16.msra.mxu2 %v955_v21 }
  0x3c   : > { %567 = vmatpush.bf16.msra.mxu1 %v954_v22  ;;  %980 = vmatpush.bf16.msra.mxu2 %v954_v22 }
  0x3e   : > { %870 = vmatmul.msk.bf16.gmra.mxu0 %vm390_vm1, %v945_v8  ;;  %875 = vmatmul.msk.bf16.gmra.mxu3 %vm390_vm1, %v950_v16 }
  0x4e   : > { %871 = vmatmul.msk.bf16.gmra.mxu0 %vm390_vm1, %v946_v9  ;;  %876 = vmatmul.msk.bf16.gmra.mxu3 %vm390_vm1, %v951_v18 }
  0x5e   : > { %872 = vmatmul.msk.bf16.gmra.mxu0 %vm390_vm1, %v947_v14 }
  0x6e   : > { %873 = vmatmul.msk.bf16.gmra.mxu0 %vm390_vm1, %v948_v17 }
  0xab   : > { %v428_v23 = vpop.f32.mrf.mxu0 }
  0xac   : > { %v429_v25 = vadd.f32 %v1053_v24, %v428_v23 }
  0xae   : > { %v468_v28 = vmax.f32 %v429_v25, 0.0 }
  0xb1   : > { %v453_v53 = vpop.f32.mrf.mxu3 }
  0xb2   : > { %v454_v62 = vadd.f32 %v1053_v24, %v453_v53 }
  0xb3   : > { %v430_v26 = vpop.f32.mrf.mxu0 }
  0xb4   : > { %v431_v27 = vadd.f32 %v1053_v24, %v430_v26  ;;  %v478_v0 = vmax.f32 %v454_v62, 0.0  ;;  %v1054_v26 = vld [vmem:[%s1408_s4] ss:$0 sm:$0xff] }
  0xb6   : > { %v469_v29 = vmax.f32 %v431_v27, 0.0 }
  0xb8   : > { %v484_v30 = vpack.c.bf16 %v469_v29, %v468_v28 }
  0xb9   : > { %v455_v57 = vpop.f32.mrf.mxu3 }
  0xba   : > { %568 = vmatmul.bf16.vlgmr.msra.gmra.mxu1 %v484_v30  ;;  %v456_v63 = vadd.f32 %v1053_v24, %v455_v57 }
  0xbb   : > { %v433_v31 = vpop.f32.mrf.mxu0 }
  0xbc   : > { %v434_v32 = vadd.f32 %v1053_v24, %v433_v31  ;;  %v479_v1 = vmax.f32 %v456_v63, 0.0 }
  0xbe   : > { %v470_v35 = vmax.f32 %v434_v32, 0.0  ;;  %v489_v2 = vpack.c.bf16 %v479_v1, %v478_v0 }
  0xc1   : > { %v458_v61 = vpop.f32.mrf.mxu3 }
  0xc2   : > { %v459_v4 = vadd.f32 %v1053_v24, %v458_v61 }
  0xc3   : > { %v435_v33 = vpop.f32.mrf.mxu0 }
  0xc4   : > { %v436_v34 = vadd.f32 %v1053_v24, %v435_v33  ;;  %v480_v7 = vmax.f32 %v459_v4, 0.0 }
  0xc6   : > { %v471_v36 = vmax.f32 %v436_v34, 0.0 }
  0xc8   : > { %v485_v37 = vpack.c.bf16 %v471_v36, %v470_v35 }
  0xc9   : > { %v460_v3 = vpop.f32.mrf.mxu3 }
  0xca   : > { %573 = vmatmul.bf16.gmra.mxu1 %v485_v37  ;;  %v461_v5 = vadd.f32 %v1053_v24, %v460_v3 }
  0xcb   : > { %v438_v38 = vpop.f32.mrf.mxu0 }
  0xcc   : > { %v439_v39 = vadd.f32 %v1053_v24, %v438_v38  ;;  %v481_v8 = vmax.f32 %v461_v5, 0.0 }
  0xce   : > { %v472_v42 = vmax.f32 %v439_v39, 0.0  ;;  %v490_v9 = vpack.c.bf16 %v481_v8, %v480_v7 }
  0xd1   : > { %v463_v6 = vpop.f32.mrf.mxu3 }
  0xd2   : > { %v464_v11 = vadd.f32 %v1053_v24, %v463_v6 }
  0xd3   : > { %v440_v40 = vpop.f32.mrf.mxu0 }
  0xd4   : > { %v441_v41 = vadd.f32 %v1053_v24, %v440_v40  ;;  %v482_v13 = vmax.f32 %v464_v11, 0.0 }
  0xd6   : > { %v473_v43 = vmax.f32 %v441_v41, 0.0 }
  0xd8   : > { %v486_v44 = vpack.c.bf16 %v473_v43, %v472_v42 }
  0xd9   : > { %v465_v10 = vpop.f32.mrf.mxu3 }
  0xda   : > { %578 = vmatmul.bf16.gmra.mxu1 %v486_v44  ;;  %v466_v12 = vadd.f32 %v1053_v24, %v465_v10 }
  0xdb   : > { %v443_v45 = vpop.f32.mrf.mxu0 }
  0xdc   : > { %v444_v46 = vadd.f32 %v1053_v24, %v443_v45  ;;  %v483_v14 = vmax.f32 %v466_v12, 0.0 }
  0xde   : > { %v474_v49 = vmax.f32 %v444_v46, 0.0  ;;  %v491_v15 = vpack.c.bf16 %v483_v14, %v482_v13 }
  0xe3   : > { %v445_v47 = vpop.f32.mrf.mxu0 }
  0xe4   : > { %v446_v48 = vadd.f32 %v1053_v24, %v445_v47 }
  0xe6   : > { %v475_v50 = vmax.f32 %v446_v48, 0.0 }
  0xe8   : > { %v487_v51 = vpack.c.bf16 %v475_v50, %v474_v49 }
  0xea   : > { %583 = vmatmul.bf16.gmra.mxu1 %v487_v51 }
  0xeb   : > { %v448_v52 = vpop.f32.mrf.mxu0 }
  0xec   : > { %v449_v54 = vadd.f32 %v1053_v24, %v448_v52 }
  0xee   : > { %v476_v58 = vmax.f32 %v449_v54, 0.0 }
  0xf3   : > { %v450_v55 = vpop.f32.mrf.mxu0 }
  0xf4   : > { %v451_v56 = vadd.f32 %v1053_v24, %v450_v55 }
  0xf6   : > { %v477_v59 = vmax.f32 %v451_v56, 0.0 }
  0xf8   : > { %v488_v60 = vpack.c.bf16 %v477_v59, %v476_v58 }
  0xfa   : > { %588 = vmatmul.bf16.vlgmr.msra.gmra.mxu2 %v488_v60 }
 0x10a   : > { %593 = vmatmul.bf16.gmra.mxu2 %v489_v2 }
 0x11a   : > { %598 = vmatmul.bf16.gmra.mxu2 %v490_v9 }
 0x12a   : > { %603 = vmatmul.bf16.gmra.mxu2 %v491_v15 }
 0x137   : > { %v569_v16 = vpop.f32.mrf.mxu1 }
 0x138   : > { %v570_v29 = vadd.f32 %v1054_v26, %v569_v16 }
 0x13a   : > { %v609_v33 = vmax.f32 %v570_v29, 0.0 }
 0x13f   : > { %v571_v17 = vpop.f32.mrf.mxu1 }
 0x140   : > { %v572_v24 = vadd.f32 %v1054_v26, %v571_v17 }
 0x142   : > { %v610_v31 = vmax.f32 %v572_v24, 0.0 }
 0x144   : > { %v626_v37 = vadd.f32 %v610_v31, %v609_v33 }
 0x147   : > { %v574_v18 = vpop.f32.mrf.mxu1 }
 0x148   : > { %v575_v30 = vadd.f32 %v1054_v26, %v574_v18 }
 0x14a   : > { %v611_v34 = vmax.f32 %v575_v30, 0.0 }
 0x14c   : > { %v627_v41 = vadd.f32 %v626_v37, %v611_v34 }
 0x14f   : > { %v576_v19 = vpop.f32.mrf.mxu1 }
 0x150   : > { %v577_v32 = vadd.f32 %v1054_v26, %v576_v19 }
 0x152   : > { %v612_v38 = vmax.f32 %v577_v32, 0.0 }
 0x154   : > { %v628_v44 = vadd.f32 %v627_v41, %v612_v38 }
 0x157   : > { %v579_v21 = vpop.f32.mrf.mxu1 }
 0x158   : > { %v580_v35 = vadd.f32 %v1054_v26, %v579_v21  ;;  %v625_v21 = vld [vmem:[#allocation2] sm:$0x1] }
 0x15a   : > { %v613_v42 = vmax.f32 %v580_v35, 0.0 }
 0x15c   : > { %v629_v47 = vadd.f32 %v628_v44, %v613_v42 }
 0x15f   : > { %v581_v23 = vpop.f32.mrf.mxu1 }
 0x160   : > { %v582_v39 = vadd.f32 %v1054_v26, %v581_v23 }
 0x162   : > { %v614_v45 = vmax.f32 %v582_v39, 0.0 }
 0x164   : > { %v630_v51 = vadd.f32 %v629_v47, %v614_v45 }
 0x167   : > { %v584_v27 = vpop.f32.mrf.mxu1 }
 0x168   : > { %v585_v43 = vadd.f32 %v1054_v26, %v584_v27 }
 0x16a   : > { %v615_v48 = vmax.f32 %v585_v43, 0.0 }
 0x16c   : > { %v631_v54 = vadd.f32 %v630_v51, %v615_v48 }
 0x16f   : > { %v586_v40 = vpop.f32.mrf.mxu1 }
 0x170   : > { %v587_v46 = vadd.f32 %v1054_v26, %v586_v40 }
 0x172   : > { %v616_v52 = vmax.f32 %v587_v46, 0.0 }
 0x174   : > { %v632_v57 = vadd.f32 %v631_v54, %v616_v52 }
 0x17d   : > { %v589_v20 = vpop.f32.mrf.mxu2 }
 0x17e   : > { %v590_v49 = vadd.f32 %v1054_v26, %v589_v20 }
 0x180   : > { %v617_v55 = vmax.f32 %v590_v49, 0.0 }
 0x182   : > { %v633_v60 = vadd.f32 %v632_v57, %v617_v55 }
 0x185   : > { %v591_v22 = vpop.f32.mrf.mxu2 }
 0x186   : > { %v592_v53 = vadd.f32 %v1054_v26, %v591_v22 }
 0x188   : > { %v618_v58 = vmax.f32 %v592_v53, 0.0 }
 0x18a   : > { %v634_v0 = vadd.f32 %v633_v60, %v618_v58 }
 0x18d   : > { %v594_v25 = vpop.f32.mrf.mxu2 }
 0x18e   : > { %v595_v56 = vadd.f32 %v1054_v26, %v594_v25 }
 0x190   : > { %v619_v61 = vmax.f32 %v595_v56, 0.0 }
 0x192   : > { %v635_v3 = vadd.f32 %v634_v0, %v619_v61 }
 0x195   : > { %v596_v28 = vpop.f32.mrf.mxu2 }
 0x196   : > { %v597_v59 = vadd.f32 %v1054_v26, %v596_v28 }
 0x198   : > { %v620_v1 = vmax.f32 %v597_v59, 0.0 }
 0x19a   : > { %v636_v6 = vadd.f32 %v635_v3, %v620_v1 }
 0x19d   : > { %v599_v36 = vpop.f32.mrf.mxu2 }
 0x19e   : > { %v600_v62 = vadd.f32 %v1054_v26, %v599_v36 }
 0x1a0   : > { %v621_v4 = vmax.f32 %v600_v62, 0.0 }
 0x1a2   : > { %v637_v8 = vadd.f32 %v636_v6, %v621_v4 }
 0x1a5   : > { %v601_v50 = vpop.f32.mrf.mxu2 }
 0x1a6   : > { %v602_v2 = vadd.f32 %v1054_v26, %v601_v50 }
 0x1a8   : > { %v622_v7 = vmax.f32 %v602_v2, 0.0 }
 0x1aa   : > { %v638_v11 = vadd.f32 %v637_v8, %v622_v7 }
 0x1ad   : > { %v604_v63 = vpop.f32.mrf.mxu2 }
 0x1ae   : > { %v605_v5 = vadd.f32 %v1054_v26, %v604_v63 }
 0x1b0   : > { %v623_v9 = vmax.f32 %v605_v5, 0.0 }
 0x1b2   : > { %v639_v13 = vadd.f32 %v638_v11, %v623_v9 }
 0x1b5   : > { %v606_v10 = vpop.f32.mrf.mxu2 }
 0x1b6   : > { %v607_v12 = vadd.f32 %v1054_v26, %v606_v10 }
 0x1b8   : > { %v624_v14 = vmax.f32 %v607_v12, 0.0 }
 0x1ba   : > { %v640_v15 = vadd.f32 %v639_v13, %v624_v14 }
 0x1bc   : > { %v641_v16 = vrot.slane %v640_v15, 4 }
 0x1be   : > { %v642_v17 = vadd.f32 %v641_v16, %v640_v15 }
 0x1c0   : > { %v643_v18 = vrot.slane %v642_v17, 2 }
 0x1c2   : > { %v644_v19 = vadd.f32 %v643_v18, %v642_v17 }
 0x1c4   : > { %v645_v20 = vrot.slane %v644_v19, 1 }
 0x1c6   : > { %v646_v22 = vadd.f32 %v645_v20, %v644_v19  ;;  %652 = sbr.rel (%p909_p1) target bundleno = 625 (0x271), region = 56 }
 0x1c8   : > { %v647_v23 = vadd.f32 %v646_v22, %v625_v21 }
 0x1ca   : > { %648 = vst [vmem:[#allocation2] sm:$0x1] %v647_v23 }
 0x1cb   : > { %v969_v25 = vld [vmem:[%s1409_s5 + $0x38] sm:$0xff]  ;;  %v968_v26 = vld [vmem:[%s1409_s5 + $0x30] sm:$0xff]  ;;  %v967_v27 = vld [vmem:[%s1409_s5 + $0x28] sm:$0xff] }
 0x1cc   : > { %721 = vmatpush.bf16.msra.mxu0 %v969_v25  ;;  %v966_v28 = vld [vmem:[%s1409_s5 + $0x20] sm:$0xff]  ;;  %v965_v24 = vld [vmem:[%s1409_s5 + $0x18] sm:$0xff]  ;;  %v964_v29 = vld [vmem:[%s1409_s5 + $0x10] sm:$0xff] }
 0x1cd   : > { %v963_v30 = vld [vmem:[%s1409_s5 + $0x8] sm:$0xff]  ;;  %v962_v33 = vld [vmem:[%s1409_s5] sm:$0xff] }
 0x1ce   : > { %v672_v35 = vld [vmem:[%s1410_s6] sm:$0x1] }
 0x1d0   : > { %722 = vmatpush.bf16.msra.mxu0 %v968_v26 }
 0x1d1   : > { %v653_v31 = vld [vmem:[#allocation2] sm:$0x1] }
 0x1d2   : > { %v654_v32 = vmul.f32 0.00390625, %v653_v31 }
 0x1d4   : > { %723 = vmatpush.bf16.msra.mxu0 %v967_v27  ;;  %v655_v34 = vpack.c.bf16 %v654_v32, %v654_v32 }
 0x1d8   : > { %724 = vmatpush.bf16.msra.mxu0 %v966_v28 }
 0x1dc   : > { %725 = vmatpush.bf16.msra.mxu0 %v965_v24 }
 0x1e0   : > { %726 = vmatpush.bf16.msra.mxu0 %v964_v29 }
 0x1e4   : > { %727 = vmatpush.bf16.msra.mxu0 %v963_v30 }
 0x1e8   : > { %728 = vmatpush.bf16.msra.mxu0 %v962_v33 }
 0x1eb   : > { %729 = vmatmul.bf16.vlgmr.msra.gmra.mxu0 %v655_v34 }
 0x268   : > { %v730_v36 = vpop.f32.mrf.mxu0 }
 0x269   : > { %v731_v37 = vadd.f32 %v730_v36, %v672_v35 }
 0x26b   : > { %734 = vst [vmem:[%s1272_s16] sm:$0x1] %v731_v37 }
 0x270   : > { %v732_v38 = vpop.f32.mrf.mxu0 }
 0x271 PF: > { %s744_s22 = scalar_lea.hbm %s1411_s7, %s1137_s28  ;;  %s746_s11 = sshll.u32 %s1272_s16, 4  ;;  %s747_s11 = int_to_ptr.vmem [resolvable:$true] %s746_s11 }
 0x272   : > { %s748_s12 = sshll.u32 %s744_s22, 4  ;;  %s736_s23 = scalar_lea.sflag [#allocation4], %s292_s18  ;;  %s749_s12 = int_to_ptr.hbm [resolvable:$true] %s748_s12 }
 0x273   : > { %s1069_s9 = sshra.s32 %s749_s12, 4  ;;  %s1075_s20 = scalar_lea.hbm %s1411_s7, 2  ;;  %s1070_s9 = int_to_ptr.hbm [resolvable:$true] %s1069_s9 }
 0x274   : > { %s1071_s10 = scalar_lea.hbm %s1070_s9, 1  ;;  %p1076_p6 = scmp.lt.s32.totalorder %s1070_s9, %s1411_s7 }
 0x275   : > { %p1072_p2 = scmp.ne.s32.totalorder %s1070_s9, %s1071_s10  ;;  %p1077_p7 = scmp.lt.s32.totalorder %s1075_s20, %s1071_s10 }
 0x277   : > { %p1073_p4 = pnand %p1072_p2, %p1241_p3  ;;  %p1078_p8 = por %p1077_p7, %p1076_p6 }
 0x279   : > { %p1074_p5 = pneg %p1073_p4 }
 0x27b   : > { %p1079_p10 = pnand %p1078_p8, %p1074_p5 }
 0x27d   : > { %1082 = shalt.err (!%p1079_p10)
}
 0x27e   : > { %981 = dma.vmem_to_hbm [thread:$0]  (%p1241_p3), %s747_s11, 16, %s749_s12, %s736_s23  }
 0x27f PF: > { %p987_p11 = scmp.ge.s32.totalorder %s1149_s8, 2  ;;  %s760_s28 = sand.u32 1, %s1121_s24  }
 0x280   : > { %s761_s18 = scalar_lea.sflag [#allocation4], %s760_s28 }
 0x281   : > { %p984_p12 = pnand %p987_p11, %p1251_p9 }
 0x283   : > { %p985_p13 = pneg %p984_p12 }
 0x285   : > { %1116 = dma.done.wait (%p985_p13), %s761_s18, 16  }
 0x286   : > { %1118 = vsyncadd (%p985_p13), %s761_s18, 4294967280  ;;  %s20_s8 = sadd.s32 1, %s1149_s8   ;;  %s1417_s13 = sld [smem:[#allocation6_spill]] }
 0x287   : > { %p17_p0 = scmp.ge.s32.totalorder %s20_s8, 6   ;;  %s1418_s16 = sld [smem:[#allocation7_spill]] }
 0x288   : > { %s1419_s24 = smov %s1125_s25  ;;  %s1420_s25 = smov %s1129_s26 }
 0x289   : > { %s1421_s26 = smov %s1259_s17  ;;  %s1422_s27 = smov %s1141_s29 }
 0x28a   : > { %s1423_s28 = smov %s1145_s30  ;;  %19 = sbr.rel (!%p17_p0) target bundleno = 5 (0x5), region = 91 }
 0x28c   : > { %s1424_s29 = smov %s1417_s13 }
 0x28d   : > { %s1425_s30 = smov %s1418_s16 }
 0x28f   :  { %766 = vsyncpa [#allocation4], 1 }
 0x290   :  { %768 = vsyncpa [#allocation4 + $0x1], 1 }

</bundles_post_ra>
